<compile_context>
chip_gen: v6e
topology: v6e:2x2x1
jax: 0.10.0
libtpu: 0.0.40
codegen_flags: <defaults>
</compile_context>

<pallas_src>
import functools
import math

import jax
import jax.numpy as jnp
from jax import lax
from jax.experimental import pallas as pl
from jax.experimental.pallas import tpu as pltpu


def attn_encoder_kernel(x_ref, wqkv_ref, bqkv_ref, wo_ref, bo_ref, o_ref,
                        *, head_count, bt, seq):
    rows, E = x_ref.shape                       # rows = bt * seq
    Dh = E // head_count

    xf = x_ref[...].astype(jnp.float32)         # (rows, E)

    # Single fused Q/K/V projection: fc{q,k,v}, the MHA in_proj slices, the
    # 1/sqrt(Dh) query scale and the sin() positional bias were all folded on
    # the host into wqkv (E, 3E) and bqkv (S, 3E).
    qkv = jnp.dot(xf, wqkv_ref[...], preferred_element_type=jnp.float32)   # (rows, 3E)
    qkv = qkv.reshape(bt, seq, 3 * E) + bqkv_ref[...]    # bias broadcast over bt

    ctx_heads = []
    for h in range(head_count):                 # short static head loop
        q_h = qkv[:, :, h * Dh:(h + 1) * Dh]                        # (bt, S, Dh)
        k_h = qkv[:, :, E + h * Dh:E + (h + 1) * Dh]
        v_h = qkv[:, :, 2 * E + h * Dh:2 * E + (h + 1) * Dh]

        # (bt, S, S) scores; query scale already folded into the fused weight.
        s = jnp.einsum('bqd,bkd->bqk', q_h, k_h,
                       preferred_element_type=jnp.float32)
        s = s - jnp.max(s, axis=-1, keepdims=True)
        e = jnp.exp(s)
        # exact reciprocal keeps the 1e-4 check tight; approx=True would move
        # the divide to the EUP slot once the tolerance is relaxed.
        probs = e * pl.reciprocal(jnp.sum(e, axis=-1, keepdims=True), approx=False)
        ctx_heads.append(jnp.einsum('bqk,bkd->bqd', probs, v_h,
                                    preferred_element_type=jnp.float32))

    # Assemble the full (rows, E) context once, then one dense K=E out_proj
    # matmul (instead of H under-filled K=Dh matmuls).
    ctx = jnp.concatenate(ctx_heads, axis=-1).reshape(rows, E)
    out = jnp.dot(ctx, wo_ref[...], preferred_element_type=jnp.float32) + bo_ref[...]
    o_ref[...] = out.astype(o_ref.dtype)


def _pick_bt(B, S, target_rows=256):
    """Pick batch-per-step bt (divisor of B) so that bt*S rows is a multiple of
    8 and <= target_rows, preferring a grid with >= 2 steps so v7x megacore
    sharding and DMA/compute pipelining stay enabled."""
    cands = [d for d in range(1, B + 1)
             if B % d == 0 and (d * S) % 8 == 0 and d * S <= target_rows]
    if not cands:
        return B                     # full batch in one step (block = full dims)
    multi = [d for d in cands if B // d >= 2]
    return max(multi) if multi else max(cands)


def attensions_encoder(x, p, head_count):
    """x: (B, S, E).  p: PyTorch-style params (weights (E,E) out x in, biases
    (E,)): wq/bq, wk/bk, wv/bv (fc layers), wiq/biq, wik/bik, wiv/biv (MHA
    in_proj slices), wo/bo (MHA out_proj)."""
    B, S, E = x.shape
    assert E % head_count == 0
    Dh = E // head_count
    scale = 1.0 / math.sqrt(Dh)
    hi = lax.Precision.HIGHEST

    # Positional distance term (batch independent); folded into the q/k/v row
    # biases so the kernel never recomputes sin().
    flat = jnp.arange(S * E, dtype=jnp.float32).reshape(S, E)
    idx = (jnp.arange(S, dtype=jnp.float32) * (E - 1)).reshape(S, 1)
    dist = jnp.sin(flat - idx)                                      # (S, E)

    def fuse(w_fc, b_fc, w_in, b_in, s):
        # s * ( ((x + dist) @ w_fc.T + b_fc) @ w_in.T + b_in )
        #   = x @ W + (dist @ W + s * (b_fc @ w_in.T + b_in)),  W = s*w_fc.T@w_in.T
        W = jnp.dot(w_fc.T, w_in.T, precision=hi) * s               # (E, E) in->out
        b_row = (jnp.dot(dist, W, precision=hi)
                 + (jnp.dot(b_fc, w_in.T, precision=hi) + b_in) * s)  # (S, E)
        return W.astype(jnp.float32), b_row.astype(jnp.float32)

    wq, bq = fuse(p["wq"], p["bq"], p["wiq"], p["biq"], scale)
    wk, bk = fuse(p["wk"], p["bk"], p["wik"], p["bik"], 1.0)
    wv, bv = fuse(p["wv"], p["bv"], p["wiv"], p["biv"], 1.0)
    wqkv = jnp.concatenate([wq, wk, wv], axis=1)                    # (E, 3E)
    bqkv = jnp.concatenate([bq, bk, bv], axis=1)                    # (S, 3E)
    wo = p["wo"].T.astype(jnp.float32)                              # (E, E) in->out
    bo = p["bo"].reshape(1, E).astype(jnp.float32)

    bt = _pick_bt(B, S)
    rows = bt * S
    x2 = x.reshape(B * S, E)

    in_specs = [
        pl.BlockSpec((rows, E), lambda i: (i, 0)),      # x rows for this step
        pl.BlockSpec((E, 3 * E), lambda i: (0, 0)),     # fused qkv weight
        pl.BlockSpec((S, 3 * E), lambda i: (0, 0)),     # fused qkv row bias (S,3E)
        pl.BlockSpec((E, E), lambda i: (0, 0)),         # out_proj weight
        pl.BlockSpec((1, E), lambda i: (0, 0)),         # out_proj bias
    ]
    out_spec = pl.BlockSpec((rows, E), lambda i: (i, 0))

    out2 = pl.pallas_call(
        functools.partial(attn_encoder_kernel,
                          head_count=head_count, bt=bt, seq=S),
        out_shape=jax.ShapeDtypeStruct((B * S, E), x.dtype),
        grid=(B // bt,),
        in_specs=in_specs,
        out_specs=out_spec,
        compiler_params=pltpu.CompilerParams(
            dimension_semantics=("parallel",),
            vmem_limit_bytes=32 * 1024 * 1024),
    )(x2, wqkv, bqkv, wo, bo)
    return out2.reshape(B, S, E)


def reference(x, p, head_count):
    """Pure-JAX reference mirroring the PyTorch forward (unfused)."""
    B, S, E = x.shape
    Dh = E // head_count
    flat = jnp.arange(S * E, dtype=jnp.float32).reshape(S, E)
    idx = (jnp.arange(S, dtype=jnp.float32) * (E - 1)).reshape(S, 1)
    x = x + jnp.sin(flat - idx)

    lin = lambda a, w, b: a @ w.T + b
    q = lin(lin(x, p["wq"], p["bq"]), p["wiq"], p["biq"])
    k = lin(lin(x, p["wk"], p["bk"]), p["wik"], p["bik"])
    v = lin(lin(x, p["wv"], p["bv"]), p["wiv"], p["biv"])

    def split(t):
        return t.reshape(B, S, head_count, Dh).transpose(0, 2, 1, 3)

    qh, kh, vh = split(q), split(k), split(v)
    s = (qh @ kh.transpose(0, 1, 3, 2)) / math.sqrt(Dh)
    pmat = jax.nn.softmax(s, axis=-1)
    ctx = (pmat @ vh).transpose(0, 2, 1, 3).reshape(B, S, E)
    return lin(ctx, p["wo"], p["bo"])


if __name__ == "__main__":
    B, S, E, H = 2, 8, 32, 4   # batch, seq, embedding_size, head_count

    key = jax.random.PRNGKey(0)
    keys = jax.random.split(key, 16)
    bound = 1.0 / math.sqrt(E)

    def w(k):
        return jax.random.uniform(k, (E, E), jnp.float32, -bound, bound)

    def b(k):
        return jax.random.uniform(k, (E,), jnp.float32, -bound, bound)

    # fcq / fck / fcv, MHA in_proj q/k/v slices, MHA out_proj (PyTorch layout).
    p = {
        "wq": w(keys[0]),  "bq": b(keys[1]),
        "wk": w(keys[2]),  "bk": b(keys[3]),
        "wv": w(keys[4]),  "bv": b(keys[5]),
        "wiq": w(keys[6]), "biq": b(keys[7]),
        "wik": w(keys[8]), "bik": b(keys[9]),
        "wiv": w(keys[10]), "biv": b(keys[11]),
        "wo": w(keys[12]), "bo": b(keys[13]),
    }

    x = jax.random.normal(keys[14], (B, S, E), jnp.float32)

    out = attensions_encoder(x, p, H)
    out = jax.block_until_ready(out)

    ref = reference(x, p, H)
    assert out.shape == (B, S, E)
    err = float(jnp.max(jnp.abs(out - ref)))
    assert jnp.allclose(out, ref, rtol=1e-4, atol=1e-4), f"max abs err {err}"
    print("KERNEL_OK")
</pallas_src>

<mosaic_0001>
module attributes {stable_mosaic.version = 11 : i64} {
  func.func @attn_encoder_kernel(%arg0: i32, %arg1: memref<8x32xf32, #tpu.memory_space<vmem>>, %arg2: memref<32x96xf32, #tpu.memory_space<vmem>>, %arg3: memref<8x96xf32, #tpu.memory_space<vmem>>, %arg4: memref<32x32xf32, #tpu.memory_space<vmem>>, %arg5: memref<1x32xf32, #tpu.memory_space<vmem>>, %arg6: memref<8x32xf32, #tpu.memory_space<vmem>>) attributes {dimension_semantics = [#tpu.dimension_semantics<parallel>], iteration_bounds = array<i64: 2>, scalar_prefetch = 0 : i64, scratch_operands = 0 : i64, tpu.core_type = #tpu.core_type<tc>, window_params = [{transform_indices = @transform_0, window_bounds = array<i64: 8, 32>}, {pipeline_mode = #tpu.pipeline_mode<synchronous>, transform_indices = @transform_1, window_bounds = array<i64: 32, 96>}, {pipeline_mode = #tpu.pipeline_mode<synchronous>, transform_indices = @transform_2, window_bounds = array<i64: 8, 96>}, {pipeline_mode = #tpu.pipeline_mode<synchronous>, transform_indices = @transform_3, window_bounds = array<i64: 32, 32>}, {pipeline_mode = #tpu.pipeline_mode<synchronous>, transform_indices = @transform_4, window_bounds = array<i64: 1, 32>}, {transform_indices = @transform_5, window_bounds = array<i64: 8, 32>}]} {
    %c0 = arith.constant 0 : index
    %c0_0 = arith.constant 0 : index
    %0 = vector.load %arg1[%c0, %c0_0] : memref<8x32xf32, #tpu.memory_space<vmem>>, vector<8x32xf32>
    %c0_1 = arith.constant 0 : index
    %c0_2 = arith.constant 0 : index
    %1 = vector.load %arg2[%c0_1, %c0_2] : memref<32x96xf32, #tpu.memory_space<vmem>>, vector<32x96xf32>
    %cst = arith.constant dense<0.000000e+00> : vector<8x96xf32>
    %2 = tpu.matmul %0, %1, %cst {dimension_numbers = #tpu.dot_dimension_numbers<[1], [0], [0], [1], [0, 0, 1, 1], [], []>} : vector<8x32xf32>, vector<32x96xf32>, vector<8x96xf32> -> vector<8x96xf32>
    %3 = vector.shape_cast %2 : vector<8x96xf32> to vector<1x8x96xf32>
    %c0_3 = arith.constant 0 : index
    %c0_4 = arith.constant 0 : index
    %4 = vector.load %arg3[%c0_3, %c0_4] : memref<8x96xf32, #tpu.memory_space<vmem>>, vector<8x96xf32>
    %5 = vector.shape_cast %4 : vector<8x96xf32> to vector<1x8x96xf32>
    %6 = arith.addf %3, %5 : vector<1x8x96xf32>
    %7 = vector.extract_strided_slice %6 {offsets = [0, 0, 0], sizes = [1, 8, 8], strides = [1, 1, 1]} : vector<1x8x96xf32> to vector<1x8x8xf32>
    %8 = vector.extract_strided_slice %6 {offsets = [0, 0, 32], sizes = [1, 8, 8], strides = [1, 1, 1]} : vector<1x8x96xf32> to vector<1x8x8xf32>
    %9 = vector.extract_strided_slice %6 {offsets = [0, 0, 64], sizes = [1, 8, 8], strides = [1, 1, 1]} : vector<1x8x96xf32> to vector<1x8x8xf32>
    "tpu.trace_start"() <{level = 10 : i32, message = "bqd,bkd->bqk"}> : () -> ()
    %cst_5 = arith.constant dense<0.000000e+00> : vector<1x8x8xf32>
    %10 = tpu.matmul %7, %8, %cst_5 {dimension_numbers = #tpu.dot_dimension_numbers<[2], [2], [1], [1], [0, 0, 0, 1, 1, 1], [0], [0]>} : vector<1x8x8xf32>, vector<1x8x8xf32>, vector<1x8x8xf32> -> vector<1x8x8xf32>
    "tpu.trace_stop"() : () -> ()
    %cst_6 = arith.constant dense<0xFF800000> : vector<1x8xf32>
    %11 = vector.multi_reduction <maximumf>, %10, %cst_6 [2] : vector<1x8x8xf32> to vector<1x8xf32>
    %12 = vector.shape_cast %11 : vector<1x8xf32> to vector<1x8x1xf32>
    %13 = vector.broadcast %12 : vector<1x8x1xf32> to vector<1x8x8xf32>
    %14 = arith.subf %10, %13 : vector<1x8x8xf32>
    %15 = math.exp %14 : vector<1x8x8xf32>
    %cst_7 = arith.constant dense<0.000000e+00> : vector<1x8xf32>
    %16 = vector.multi_reduction <add>, %15, %cst_7 [2] : vector<1x8x8xf32> to vector<1x8xf32>
    %17 = vector.shape_cast %16 : vector<1x8xf32> to vector<1x8x1xf32>
    %18 = tpu.reciprocal %17 : vector<1x8x1xf32> -> vector<1x8x1xf32>
    %19 = vector.broadcast %18 : vector<1x8x1xf32> to vector<1x8x8xf32>
    %20 = arith.mulf %15, %19 : vector<1x8x8xf32>
    "tpu.trace_start"() <{level = 10 : i32, message = "bqk,bkd->bqd"}> : () -> ()
    %cst_8 = arith.constant dense<0.000000e+00> : vector<1x8x8xf32>
    %21 = tpu.matmul %20, %9, %cst_8 {dimension_numbers = #tpu.dot_dimension_numbers<[2], [1], [1], [2], [0, 0, 0, 1, 1, 2], [0], [0]>} : vector<1x8x8xf32>, vector<1x8x8xf32>, vector<1x8x8xf32> -> vector<1x8x8xf32>
    "tpu.trace_stop"() : () -> ()
    %22 = vector.extract_strided_slice %6 {offsets = [0, 0, 8], sizes = [1, 8, 8], strides = [1, 1, 1]} : vector<1x8x96xf32> to vector<1x8x8xf32>
    %23 = vector.extract_strided_slice %6 {offsets = [0, 0, 40], sizes = [1, 8, 8], strides = [1, 1, 1]} : vector<1x8x96xf32> to vector<1x8x8xf32>
    %24 = vector.extract_strided_slice %6 {offsets = [0, 0, 72], sizes = [1, 8, 8], strides = [1, 1, 1]} : vector<1x8x96xf32> to vector<1x8x8xf32>
    "tpu.trace_start"() <{level = 10 : i32, message = "bqd,bkd->bqk"}> : () -> ()
    %cst_9 = arith.constant dense<0.000000e+00> : vector<1x8x8xf32>
    %25 = tpu.matmul %22, %23, %cst_9 {dimension_numbers = #tpu.dot_dimension_numbers<[2], [2], [1], [1], [0, 0, 0, 1, 1, 1], [0], [0]>} : vector<1x8x8xf32>, vector<1x8x8xf32>, vector<1x8x8xf32> -> vector<1x8x8xf32>
    "tpu.trace_stop"() : () -> ()
    %cst_10 = arith.constant dense<0xFF800000> : vector<1x8xf32>
    %26 = vector.multi_reduction <maximumf>, %25, %cst_10 [2] : vector<1x8x8xf32> to vector<1x8xf32>
    %27 = vector.shape_cast %26 : vector<1x8xf32> to vector<1x8x1xf32>
    %28 = vector.broadcast %27 : vector<1x8x1xf32> to vector<1x8x8xf32>
    %29 = arith.subf %25, %28 : vector<1x8x8xf32>
    %30 = math.exp %29 : vector<1x8x8xf32>
    %cst_11 = arith.constant dense<0.000000e+00> : vector<1x8xf32>
    %31 = vector.multi_reduction <add>, %30, %cst_11 [2] : vector<1x8x8xf32> to vector<1x8xf32>
    %32 = vector.shape_cast %31 : vector<1x8xf32> to vector<1x8x1xf32>
    %33 = tpu.reciprocal %32 : vector<1x8x1xf32> -> vector<1x8x1xf32>
    %34 = vector.broadcast %33 : vector<1x8x1xf32> to vector<1x8x8xf32>
    %35 = arith.mulf %30, %34 : vector<1x8x8xf32>
    "tpu.trace_start"() <{level = 10 : i32, message = "bqk,bkd->bqd"}> : () -> ()
    %cst_12 = arith.constant dense<0.000000e+00> : vector<1x8x8xf32>
    %36 = tpu.matmul %35, %24, %cst_12 {dimension_numbers = #tpu.dot_dimension_numbers<[2], [1], [1], [2], [0, 0, 0, 1, 1, 2], [0], [0]>} : vector<1x8x8xf32>, vector<1x8x8xf32>, vector<1x8x8xf32> -> vector<1x8x8xf32>
    "tpu.trace_stop"() : () -> ()
    %37 = vector.extract_strided_slice %6 {offsets = [0, 0, 16], sizes = [1, 8, 8], strides = [1, 1, 1]} : vector<1x8x96xf32> to vector<1x8x8xf32>
    %38 = vector.extract_strided_slice %6 {offsets = [0, 0, 48], sizes = [1, 8, 8], strides = [1, 1, 1]} : vector<1x8x96xf32> to vector<1x8x8xf32>
    %39 = vector.extract_strided_slice %6 {offsets = [0, 0, 80], sizes = [1, 8, 8], strides = [1, 1, 1]} : vector<1x8x96xf32> to vector<1x8x8xf32>
    "tpu.trace_start"() <{level = 10 : i32, message = "bqd,bkd->bqk"}> : () -> ()
    %cst_13 = arith.constant dense<0.000000e+00> : vector<1x8x8xf32>
    %40 = tpu.matmul %37, %38, %cst_13 {dimension_numbers = #tpu.dot_dimension_numbers<[2], [2], [1], [1], [0, 0, 0, 1, 1, 1], [0], [0]>} : vector<1x8x8xf32>, vector<1x8x8xf32>, vector<1x8x8xf32> -> vector<1x8x8xf32>
    "tpu.trace_stop"() : () -> ()
    %cst_14 = arith.constant dense<0xFF800000> : vector<1x8xf32>
    %41 = vector.multi_reduction <maximumf>, %40, %cst_14 [2] : vector<1x8x8xf32> to vector<1x8xf32>
    %42 = vector.shape_cast %41 : vector<1x8xf32> to vector<1x8x1xf32>
    %43 = vector.broadcast %42 : vector<1x8x1xf32> to vector<1x8x8xf32>
    %44 = arith.subf %40, %43 : vector<1x8x8xf32>
    %45 = math.exp %44 : vector<1x8x8xf32>
    %cst_15 = arith.constant dense<0.000000e+00> : vector<1x8xf32>
    %46 = vector.multi_reduction <add>, %45, %cst_15 [2] : vector<1x8x8xf32> to vector<1x8xf32>
    %47 = vector.shape_cast %46 : vector<1x8xf32> to vector<1x8x1xf32>
    %48 = tpu.reciprocal %47 : vector<1x8x1xf32> -> vector<1x8x1xf32>
    %49 = vector.broadcast %48 : vector<1x8x1xf32> to vector<1x8x8xf32>
    %50 = arith.mulf %45, %49 : vector<1x8x8xf32>
    "tpu.trace_start"() <{level = 10 : i32, message = "bqk,bkd->bqd"}> : () -> ()
    %cst_16 = arith.constant dense<0.000000e+00> : vector<1x8x8xf32>
    %51 = tpu.matmul %50, %39, %cst_16 {dimension_numbers = #tpu.dot_dimension_numbers<[2], [1], [1], [2], [0, 0, 0, 1, 1, 2], [0], [0]>} : vector<1x8x8xf32>, vector<1x8x8xf32>, vector<1x8x8xf32> -> vector<1x8x8xf32>
    "tpu.trace_stop"() : () -> ()
    %52 = vector.extract_strided_slice %6 {offsets = [0, 0, 24], sizes = [1, 8, 8], strides = [1, 1, 1]} : vector<1x8x96xf32> to vector<1x8x8xf32>
    %53 = vector.extract_strided_slice %6 {offsets = [0, 0, 56], sizes = [1, 8, 8], strides = [1, 1, 1]} : vector<1x8x96xf32> to vector<1x8x8xf32>
    %54 = vector.extract_strided_slice %6 {offsets = [0, 0, 88], sizes = [1, 8, 8], strides = [1, 1, 1]} : vector<1x8x96xf32> to vector<1x8x8xf32>
    "tpu.trace_start"() <{level = 10 : i32, message = "bqd,bkd->bqk"}> : () -> ()
    %cst_17 = arith.constant dense<0.000000e+00> : vector<1x8x8xf32>
    %55 = tpu.matmul %52, %53, %cst_17 {dimension_numbers = #tpu.dot_dimension_numbers<[2], [2], [1], [1], [0, 0, 0, 1, 1, 1], [0], [0]>} : vector<1x8x8xf32>, vector<1x8x8xf32>, vector<1x8x8xf32> -> vector<1x8x8xf32>
    "tpu.trace_stop"() : () -> ()
    %cst_18 = arith.constant dense<0xFF800000> : vector<1x8xf32>
    %56 = vector.multi_reduction <maximumf>, %55, %cst_18 [2] : vector<1x8x8xf32> to vector<1x8xf32>
    %57 = vector.shape_cast %56 : vector<1x8xf32> to vector<1x8x1xf32>
    %58 = vector.broadcast %57 : vector<1x8x1xf32> to vector<1x8x8xf32>
    %59 = arith.subf %55, %58 : vector<1x8x8xf32>
    %60 = math.exp %59 : vector<1x8x8xf32>
    %cst_19 = arith.constant dense<0.000000e+00> : vector<1x8xf32>
    %61 = vector.multi_reduction <add>, %60, %cst_19 [2] : vector<1x8x8xf32> to vector<1x8xf32>
    %62 = vector.shape_cast %61 : vector<1x8xf32> to vector<1x8x1xf32>
    %63 = tpu.reciprocal %62 : vector<1x8x1xf32> -> vector<1x8x1xf32>
    %64 = vector.broadcast %63 : vector<1x8x1xf32> to vector<1x8x8xf32>
    %65 = arith.mulf %60, %64 : vector<1x8x8xf32>
    "tpu.trace_start"() <{level = 10 : i32, message = "bqk,bkd->bqd"}> : () -> ()
    %cst_20 = arith.constant dense<0.000000e+00> : vector<1x8x8xf32>
    %66 = tpu.matmul %65, %54, %cst_20 {dimension_numbers = #tpu.dot_dimension_numbers<[2], [1], [1], [2], [0, 0, 0, 1, 1, 2], [0], [0]>} : vector<1x8x8xf32>, vector<1x8x8xf32>, vector<1x8x8xf32> -> vector<1x8x8xf32>
    "tpu.trace_stop"() : () -> ()
    %67 = tpu.concatenate %21, %36, %51, %66 in 2 : vector<1x8x8xf32>, vector<1x8x8xf32>, vector<1x8x8xf32>, vector<1x8x8xf32> -> vector<1x8x32xf32>
    %68 = vector.shape_cast %67 : vector<1x8x32xf32> to vector<8x32xf32>
    %c0_21 = arith.constant 0 : index
    %c0_22 = arith.constant 0 : index
    %69 = vector.load %arg4[%c0_21, %c0_22] : memref<32x32xf32, #tpu.memory_space<vmem>>, vector<32x32xf32>
    %cst_23 = arith.constant dense<0.000000e+00> : vector<8x32xf32>
    %70 = tpu.matmul %68, %69, %cst_23 {dimension_numbers = #tpu.dot_dimension_numbers<[1], [0], [0], [1], [0, 0, 1, 1], [], []>} : vector<8x32xf32>, vector<32x32xf32>, vector<8x32xf32> -> vector<8x32xf32>
    %c0_24 = arith.constant 0 : index
    %c0_25 = arith.constant 0 : index
    %71 = vector.load %arg5[%c0_24, %c0_25] : memref<1x32xf32, #tpu.memory_space<vmem>>, vector<1x32xf32>
    %72 = vector.broadcast %71 : vector<1x32xf32> to vector<8x32xf32>
    %73 = arith.addf %70, %72 : vector<8x32xf32>
    %c0_26 = arith.constant 0 : index
    %c0_27 = arith.constant 0 : index
    %74 = vector.load %arg6[%c0_26, %c0_27] : memref<8x32xf32, #tpu.memory_space<vmem>>, vector<8x32xf32>
    tpu.vector_store %arg6[%c0_26, %c0_27], %73 {strides = array<i32>} : memref<8x32xf32, #tpu.memory_space<vmem>>, vector<8x32xf32>,
    return
  }
  func.func @transform_0(%arg0: i32) -> (i32, i32) {
    %c0_i32 = arith.constant 0 : i32
    %c0_i32_0 = arith.constant 0 : i32
    return %arg0, %c0_i32 : i32, i32
  }
  func.func @transform_1(%arg0: i32) -> (i32, i32) {
    %c0_i32 = arith.constant 0 : i32
    %c0_i32_0 = arith.constant 0 : i32
    %c0_i32_1 = arith.constant 0 : i32
    return %c0_i32, %c0_i32_0 : i32, i32
  }
  func.func @transform_2(%arg0: i32) -> (i32, i32) {
    %c0_i32 = arith.constant 0 : i32
    %c0_i32_0 = arith.constant 0 : i32
    %c0_i32_1 = arith.constant 0 : i32
    return %c0_i32, %c0_i32_0 : i32, i32
  }
  func.func @transform_3(%arg0: i32) -> (i32, i32) {
    %c0_i32 = arith.constant 0 : i32
    %c0_i32_0 = arith.constant 0 : i32
    %c0_i32_1 = arith.constant 0 : i32
    return %c0_i32, %c0_i32_0 : i32, i32
  }
  func.func @transform_4(%arg0: i32) -> (i32, i32) {
    %c0_i32 = arith.constant 0 : i32
    %c0_i32_0 = arith.constant 0 : i32
    %c0_i32_1 = arith.constant 0 : i32
    return %c0_i32, %c0_i32_0 : i32, i32
  }
  func.func @transform_5(%arg0: i32) -> (i32, i32) {
    %c0_i32 = arith.constant 0 : i32
    %c0_i32_0 = arith.constant 0 : i32
    return %arg0, %c0_i32 : i32, i32
  }
}

</mosaic_0001>

<bundles_post_ra>
// kernel: tpu_custom_call.1
= control target key start
LH: loop header
LB: loop body
LE: loop exit
PB: predicated region body
PF: predicated region fallthrough
CT: control target
= control target key end

     0   :  { %10 = vsyncpa [#allocation3], 0  ;;  %s1970_s0 = inlined_call_operand.hbm [shape: f32[16,32], index: 0, kind: input, shape index: {}]   ;;  %s1971_s1 = inlined_call_operand.hbm [shape: f32[32,96], index: 1, kind: input, shape index: {}]   ;;  %s1972_s2 = inlined_call_operand.hbm [shape: f32[8,96], index: 2, kind: input, shape index: {}]   ;;  %s1973_s3 = inlined_call_operand.hbm [shape: f32[32,32], index: 3, kind: input, shape index: {}]   ;;  %s1974_s4 = inlined_call_operand.vmem [shape: f32[1,32], index: 4, kind: input, shape index: {}]   ;;  %s1975_s5 = inlined_call_operand.hbm [shape: f32[16,32], index: 5, kind: output, shape index: {}]  }
   0x1   :  { %12 = vsyncpa [#allocation3 + $0x1], 0 }
   0x2   :  { %13 = vsyncpa [#allocation6], 0 }
   0x3   :  { %14 = vsyncpa [#allocation9], 0 }
   0x4   :  { %15 = vsyncpa [#allocation4], 0 }
   0x5   :  { %17 = vsyncpa [#allocation4 + $0x1], 0  ;;  %s1703_s18 = smov 0   ;;  %s1705_s19 = smov 0  }
   0x6   :  { %s1707_s20 = smov 0   ;;  %s1709_s21 = smov 0  }
   0x7 LB: > { %s1724_s22 = sadd.s32 4294967295, %s1648_s21   ;;  %s1238_s23 = sadd.s32 4294967294, %s1648_s21   ;;  %s1648_s21 = sphi %s1709_s21, %s1999_s21   ;;  %s1644_s20 = sphi %s1707_s20, %s1998_s20   ;;  %s1640_s19 = sphi %s1705_s19, %s1997_s19   ;;  %s1636_s18 = sphi %s1703_s18, %s1996_s18  }
   0x8   : > { %p43_p0 = scmp.ne.s32.totalorder %s1640_s19, %s1636_s18  ;;  %p1976_p1 = scmp.eq.s32.totalorder %s1724_s22, 0 }
   0x9   : > { %p157_p3 = scmp.eq.s32.totalorder %s1238_s23, 1  ;;  %p1239_p5 = scmp.ge.s32.totalorder %s1648_s21, 1 }
   0xa   : > { %p1733_p4 = por %p1976_p1, %p43_p0  ;;  %p164_p7 = scmp.lt.s32.totalorder %s1648_s21, 3 }
   0xb   : > { %p1738_p6 = por %p157_p3, %p43_p0  ;;  %s1650_s27 = smov [#allocation5]  }
   0xc   : > { %s1980_s24 = scalar_select %p1733_p4, 1, 0 }
   0xd   : > { %s1981_s25 = scalar_select %p1738_p6, 1, 0 }
   0xe   : > { %p1743_p8 = pnand %p1239_p5, %p164_p7  ;;  %s176_s28 = sshll.u32 %s1650_s27, 4  ;;  %s177_s28 = int_to_ptr.vmem [resolvable:$true] %s176_s28 }
   0xf   : > { %s1651_s30 = smov [#allocation7]   ;;  %s1652_s7 = smov [#allocation8]  }
  0x10   : > { %s1982_s26 = scalar_select %p1743_p8, 1, 0 }
  0x11   : > { %p1375_p9 = pneg %p1743_p8  ;;  %s190_s6 = sshll.u32 %s1651_s30, 4  ;;  %s191_s6 = int_to_ptr.vmem [resolvable:$true] %s190_s6 }
  0x12   : > { %s200_s8 = sshll.u32 %s1652_s7, 4  ;;  %s1481_s9 = scalar_lea.vmem %s177_s28, 512  ;;  %s201_s8 = int_to_ptr.vmem [resolvable:$true] %s200_s8 }
  0x13   : > { %p1752_p11 = pnand %p1375_p9, %p1976_p1  ;;  %p1482_p13 = scmp.ne.s32.totalorder %s177_s28, %s1481_s9 }
  0x14   : > { %p1489_p5 = scmp.lt.s32.totalorder %s177_s28, %s177_s28  ;;  %p1490_p7 = scmp.lt.s32.totalorder %s1481_s9, %s1481_s9 }
  0x15   : > { %p1472_p12 = pneg %p1752_p11 }
  0x16   : > { %p1491_p9 = por %p1490_p7, %p1489_p5 }
  0x17   : > { %p1484_p0 = pnand %p1482_p13, %p1472_p12 }
  0x19   : > { %p1485_p3 = pneg %p1484_p0 }
  0x1b   : > { %p1492_p10 = pnand %p1491_p9, %p1485_p3 }
  0x1d   : > { %1495 = shalt.err (!%p1492_p10)
}
  0x1e   : > { %s1653_s10 = smov 128   ;;  %s1654_s11 = smov 8  }
  0x1f   : > { %1378 = dma.hbm_to_vmem [thread:$0]  (!%p1752_p11), %s1971_s1, 512, %s177_s28, [#allocation6], %s1653_s10, %s1653_s10, %s1654_s11  }
  0x20   : > { %s1507_s14 = scalar_lea.vmem %s191_s6, 128  ;;  %p1515_p2 = scmp.lt.s32.totalorder %s191_s6, %s191_s6 }
  0x21   : > { %p1508_p1 = scmp.ne.s32.totalorder %s191_s6, %s1507_s14  ;;  %p1516_p6 = scmp.lt.s32.totalorder %s1507_s14, %s1507_s14 }
  0x23   : > { %p1510_p13 = pnand %p1508_p1, %p1472_p12  ;;  %p1517_p5 = por %p1516_p6, %p1515_p2 }
  0x25   : > { %p1511_p0 = pneg %p1510_p13 }
  0x27   : > { %p1518_p3 = pnand %p1517_p5, %p1511_p0 }
  0x29   : > { %1521 = shalt.err (!%p1518_p3)
}
  0x2a   : > { %1381 = dma.hbm_to_vmem [thread:$0]  (!%p1752_p11), %s1972_s2, 128, %s191_s6, [#allocation6]  }
  0x2b   : > { %s1533_s17 = scalar_lea.vmem %s201_s8, 512  ;;  %p1541_p9 = scmp.lt.s32.totalorder %s201_s8, %s201_s8 }
  0x2c   : > { %p1534_p10 = scmp.ne.s32.totalorder %s201_s8, %s1533_s17  ;;  %p1542_p13 = scmp.lt.s32.totalorder %s1533_s17, %s1533_s17 }
  0x2e   : > { %p1536_p7 = pnand %p1534_p10, %p1472_p12  ;;  %p1543_p4 = por %p1542_p13, %p1541_p9 }
  0x30   : > { %p1537_p1 = pneg %p1536_p7 }
  0x32   : > { %p1544_p2 = pnand %p1543_p4, %p1537_p1 }
  0x34   : > { %1547 = shalt.err (!%p1544_p2)
}
  0x35   : > { %1384 = dma.hbm_to_vmem [thread:$0]  (!%p1752_p11), %s1973_s3, 512, %s201_s8, [#allocation9], %s1653_s10, %s1653_s10, %s1654_s11  }
  0x36   : > { %s1783_s28 = sadd.s32 1, %s1648_s21   ;;  %s30_s29 = sadd.s32 1, %s1644_s20 }
  0x37   : > { %s27_s30 = ssub.s32 %s1648_s21, %s1783_s28  ;;  %p37_p6 = scmp.ne.s32.totalorder %s1644_s20, %s1640_s19 }
  0x38   : > { %p28_p4 = scmp.eq.s32.totalorder %s27_s30, 0  ;;  %p38_p12 = scmp.eq.s32.totalorder %s1648_s21, 0 }
  0x39   : > { %p1396_p0 = scmp.lt.s32.totalorder %s1648_s21, 2  ;;  %p1984_p3 = scmp.eq.s32.totalorder %s1724_s22, 1 }
  0x3a   : > { %s1793_s6 = scalar_select %p28_p4, %s1644_s20, %s30_s29  }
  0x3b   : > { %p39_p5 = por %p38_p12, %p37_p6  ;;  %p1797_p10 = por %p1984_p3, %p37_p6 }
  0x3c   : > { %s217_s9 = sand.u32 1, %s1644_s20   ;;  %s1245_s12 = sshll.u32 %s1648_s21, 7 }
  0x3d   : > { %s1985_s7 = scalar_select %p1797_p10, 1, 0 }
  0x3e   : > { %s1244_s8 = sshll.u32 %s217_s9, 3  ;;  %s1806_s13 = scalar_lea.hbm %s1970_s0, %s1245_s12 }
  0x3f   : > { %s221_s14 = scalar_lea.vmem [#allocation2], %s1244_s8  ;;  %p1808_p11 = pnand %p1396_p0, %p39_p5 }
  0x40   : > { %s228_s15 = sshll.u32 %s221_s14, 4  ;;  %s218_s17 = scalar_lea.sflag [#allocation3], %s217_s9  ;;  %s229_s15 = int_to_ptr.vmem [resolvable:$true] %s228_s15 }
  0x41   : > { %s1548_s23 = scalar_lea.hbm %s1806_s13, 128  ;;  %p1550_p1 = pneg %p1808_p11 }
  0x42   : > { %p1549_p7 = scmp.ne.s32.totalorder %s1806_s13, %s1548_s23  ;;  %s1553_s29 = scalar_lea.hbm %s1970_s0, 256 }
  0x43   : > { %p1554_p2 = scmp.lt.s32.totalorder %s1806_s13, %s1970_s0  ;;  %p1555_p4 = scmp.lt.s32.totalorder %s1553_s29, %s1548_s23 }
  0x44   : > { %p1551_p9 = pnand %p1550_p1, %p1549_p7 }
  0x45   : > { %p1556_p6 = por %p1555_p4, %p1554_p2 }
  0x46   : > { %p1552_p13 = pneg %p1551_p9 }
  0x48   : > { %p1557_p12 = pnand %p1556_p6, %p1552_p13 }
  0x4a   : > { %1560 = shalt.err (!%p1557_p12)
}
  0x4b   : > { %s1561_s10 = scalar_lea.vmem %s229_s15, 128  ;;  %s1655_s9 = smov [#allocation2]  }
  0x4c   : > { %p1562_p0 = scmp.ne.s32.totalorder %s229_s15, %s1561_s10  ;;  %s1566_s11 = sshll.u32 %s1655_s9, 4  ;;  %s1567_s11 = int_to_ptr.vmem [resolvable:$false] %s1566_s11 }
  0x4d   : > { %s1568_s14 = scalar_lea.vmem %s1567_s11, 256  ;;  %p1569_p7 = scmp.lt.s32.totalorder %s229_s15, %s1567_s11 }
  0x4e   : > { %p1564_p5 = pnand %p1562_p0, %p1550_p1  ;;  %p1570_p9 = scmp.lt.s32.totalorder %s1568_s14, %s1561_s10 }
  0x50   : > { %p1565_p3 = pneg %p1564_p5  ;;  %p1571_p10 = por %p1570_p9, %p1569_p7 }
  0x52   : > { %p1572_p8 = pnand %p1571_p10, %p1565_p3 }
  0x54   : > { %1575 = shalt.err (!%p1572_p8)
}
  0x55   : > { %1388 = dma.hbm_to_vmem [thread:$0]  (!%p1808_p11), %s1806_s13, 128, %s229_s15, %s218_s17  }
  0x56   : > { %p1987_p13 = scmp.ne.s32.totalorder %s1982_s26, 0 }
  0x57   : > { %s1829_s23 = sand.u32 (!%p1987_p13), 1, %s1640_s19   ;;  %p1988_p10 = scmp.ne.s32.totalorder (!%p1987_p13), %s1980_s24, 0 }
  0x58   : > { %237 = sbr.rel (%p1987_p13) target bundleno = 1999 (0x7cf), region = 40  ;;  %s1247_s27 = sshll.u32 (!%p1987_p13), %s1829_s23, 3 }
  0x59   : > { %s240_s30 = scalar_lea.sflag (!%p1987_p13), [#allocation3], %s1829_s23  ;;  %s243_s29 = scalar_lea.vmem (!%p1987_p13), [#allocation2], %s1247_s27 }
  0x5d   : > { %1619 = dma.done.wait (%p1988_p10), %s240_s30, 128  }
  0x5e   : > { %1621 = vsyncadd (%p1988_p10), %s240_s30, 4294967168  ;;  %p1989_p8 = scmp.eq.s32.totalorder %s1724_s22, 0 }
  0x60   : > { %1623 = dma.done.wait (%p1989_p8), [#allocation6], 640   ;;  %p1990_p11 = pmov %p1989_p8 }
  0x61   : > { %p1991_p1 = pmov %p1989_p8 }
  0x62   : > { %1625 = vsyncadd (%p1990_p11), [#allocation6], 4294966656 }
  0x63   : > { %1627 = dma.done.wait (%p1991_p1), [#allocation9], 512   ;;  %p1992_p2 = pmov %p1991_p1 }
  0x64   : > { %v1656_v0 = vmov 0.0   ;;  %vm1657_vm0 = vmmov 0   ;;  %v286_v1 = vld [vmem:[#allocation5 + $0x18] sm:$0xff]  ;;  %v285_v2 = vld [vmem:[#allocation5 + $0x10] sm:$0xff]  ;;  %v284_v3 = vld [vmem:[#allocation5 + $0x8] sm:$0xff]  ;;  %vm287_vm1 = vcmask 261120  }
  0x65   : > { %1629 = vsyncadd (%p1992_p2), [#allocation9], 4294966784  ;;  %1297 = vmatprep.subr.mxu0 %v1656_v0  ;;  %1305 = vmatprep.mubr.msk.f32.mxu0 %vm1657_vm0, %v1656_v0  ;;  %v283_v4 = vld [vmem:[#allocation5] sm:$0xff]  ;;  %v282_v5 = vld [vmem:[%s243_s29] sm:$0xff]  ;;  %s1658_s24 = smov 64   ;;  %s1659_s26 = smov 96  }
  0x66   : > { %1308 = vmatprep.subr.mxu1 %v1656_v0  ;;  %1310 = vmatprep.mubr.msk.f32.mxu1 %vm1657_vm0, %v1656_v0  ;;  %v361_v6 = vld [vmem:[#allocation7] sm:$0xff]  ;;  %s1660_s13 = smov 88   ;;  %s1661_s15 = smov 120   ;;  %vm366_vm2 = vcmask 64512   ;;  %vm1036_vm3 = vcmask 130048   ;;  %vm1038_vm4 = vcmask 195584  }
  0x67   : > { %1298 = vmatpush3.msra.mxu0 %v286_v1  ;;  %s1662_s16 = smov 80   ;;  %s1663_s17 = smov 72  }
  0x68   : > { %1299 = vmatprep.subr.mxu0 %v1656_v0  ;;  %s1664_s12 = smov 112   ;;  %s1665_s8 = smov 104  }
  0x69   : > { %1300 = vmatpush3.msra.mxu0 %v285_v2  ;;  %s1666_s10 = smov 56   ;;  %s1667_s9 = smov 48  }
  0x6a   : > { %1301 = vmatprep.subr.mxu0 %v1656_v0  ;;  %s1668_s11 = smov 40   ;;  %s1669_s14 = smov 8  }
  0x6b   : > { %1302 = vmatpush3.msra.mxu0 %v284_v3  ;;  %s1670_s30 = smov 16   ;;  %s1671_s29 = smov 24  }
  0x6c   : > { %1303 = vmatprep.subr.mxu0 %v1656_v0  ;;  %p1993_p6 = scmp.ne.s32.totalorder %s1985_s7, 0 }
  0x6d   : > { %1304 = vmatpush3.msra.mxu0 %v283_v4  ;;  %v1043_v4 = vld [vmem:[#allocation8 + $0x18] sm:$0xff] }
  0x6e   : > { %1306 = vmatmul.mubr.msk.f32.vlgmr.msra.gmra.mxu0 %vm287_vm1, %v282_v5  ;;  %1328 = vmatprep.subr.mxu0 %v1656_v0  ;;  %v1042_v5 = vld [vmem:[#allocation8 + $0x10] sm:$0xff] }
  0x6f   : > { %1330 = vmatprep.mubr.msk.f32.mxu0 %vm1657_vm0, %v1656_v0 }
 0x12e   : > { %v357_v7 = vpop.f32.mrf.mxu0 }
 0x12f   : > { %v1860_v8 = vadd.f32 %v361_v6, %v357_v7  ;;  %v1041_v6 = vld [vmem:[#allocation8 + $0x8] sm:$0xff]  ;;  %v1040_v7 = vld [vmem:[#allocation8] sm:$0xff] }
 0x130   : > { %v1307_v9 = vpop.f32.mrf.mxu0 }
 0x131   : > { %452 = vrot.lane.b32.xlu1 %v1860_v8, %s1658_s24  ;;  %364 = vrot.lane.b32.xlu0 %v1860_v8, %s1659_s26 }
 0x135   : > { %530 = vrot.lane.b32.xlu1 %v1860_v8, %s1660_s13  ;;  %s1268_s13 = sshll.u32 %s1724_s22, 7  ;;  %s1672_s22 = smov [#allocation10]  }
 0x139   : > { %528 = vrot.lane.b32.xlu1 %v1860_v8, %s1661_s15  ;;  %s281_s15 = scalar_lea.vmem [#allocation10], %s1247_s27  ;;  %s1580_s27 = sshll.u32 %s1672_s22, 4  ;;  %s1581_s27 = int_to_ptr.vmem [resolvable:$false] %s1580_s27 }
 0x13d   : > { %695 = vrot.lane.b32.xlu1 %v1860_v8, %s1662_s16  ;;  %s1139_s16 = sshll.u32 %s281_s15, 4  ;;  %s1140_s16 = int_to_ptr.vmem [resolvable:$true] %s1139_s16 }
 0x13e   : > { %p1583_p5 = scmp.lt.s32.totalorder %s1140_s16, %s1581_s27 }
 0x1a3   : > { %v453_v10 = vpop.permute.xlu1 %452  ;;  %v365_v11 = vpop.permute.xlu0 %364 }
 0x1a4   : > { %1309 = vmatpush3.xpose.msk.msra.mxu1 %vm366_vm2, %v365_v11 }
 0x1a5   : > { %1313 = vmatprep.subr.mxu1 %v1656_v0 }
 0x1a7   : > { %v531_v12 = vpop.permute.xlu1 %530  ;;  %1311 = vmatmul.mubr.msk.f32.vlgmr.msra.gmra.mxu1 %vm366_vm2, %v1860_v8 }
 0x1a8   : > { %1314 = vmatpush3.msra.mxu1 %v453_v10  ;;  %1315 = vmatprep.mubr.msk.f32.mxu1 %vm1657_vm0, %v1656_v0 }
 0x1a9   : > { %1318 = vmatprep.subr.mxu1 %v1656_v0 }
 0x1ab   : > { %v529_v13 = vpop.permute.xlu1 %528 }
 0x1af   : > { %v696_v14 = vpop.permute.xlu1 %695 }
 0x1b0   : > { %1329 = vmatpush3.xpose.msk.msra.mxu0 %vm366_vm2, %v696_v14 }
 0x1b1   : > { %1338 = vmatprep.subr.mxu0 %v1656_v0 }
 0x267   : > { %v437_v15 = vpop.f32.mrf.mxu1 }
 0x268   : > { %v441_v16 = vsel %vm366_vm2, %v437_v15, -inf }
 0x269   : > { %442 = vmax.xlane.f32.xlu0 %v441_v16  ;;  %v1312_v17 = vpop.f32.mrf.mxu1 }
 0x27f   : > { %860 = vrot.lane.b32.xlu0 %v1860_v8, %s1663_s17 }
 0x2f2   : > { %v443_v18 = vpop.xlane.xlu0 %442 }
 0x2f3   : > { %v444_v19 = vsub.f32 %v437_v15, %v443_v18 }
 0x2f5   : > { %v445_v20 = vmul.f32 1.442695, %v444_v19  ;;  %v1265_v19 = vld [vmem:[%s1974_s4] ss:$0 sm:$0xff] }
 0x2f6   : > { %v861_v25 = vpop.permute.xlu0 %860 }
 0x2f7   : > { %1454 = vpow2.f32 %v445_v20 }
 0x304   : > { %v1455_v21 = vpop.eup %1454 }
 0x305   : > { %v447_v22 = vsel %vm366_vm2, %v1455_v21, 0.0 }
 0x306   : > { %448 = vadd.xlane.f32.xlu1 %v447_v22 }
 0x317   : > { %693 = vrot.lane.b32.xlu1 %v1860_v8, %s1664_s12 }
 0x31b   : > { %858 = vrot.lane.b32.xlu1 %v1860_v8, %s1665_s8  ;;  %s1932_s8 = scalar_lea.hbm %s1975_s5, %s1268_s13 }
 0x38f   : > { %v449_v23 = vpop.xlane.xlu1 %448 }
 0x390   : > { %1456 = vrcp.f32 %v449_v23 }
 0x393   : > { %v694_v24 = vpop.permute.xlu1 %693 }
 0x394   : > { %1331 = vmatmul.mubr.msk.f32.vlgmr.msra.gmra.mxu0 %vm366_vm2, %v694_v24 }
 0x395   : > { %1339 = vmatpush3.xpose.msk.msra.mxu0 %vm366_vm2, %v861_v25  ;;  %1340 = vmatprep.mubr.msk.f32.mxu0 %vm1657_vm0, %v1656_v0 }
 0x396   : > { %1348 = vmatprep.subr.mxu0 %v1656_v0 }
 0x397   : > { %v859_v26 = vpop.permute.xlu1 %858 }
 0x398   : > { %1341 = vmatmul.mubr.msk.f32.vlgmr.msra.gmra.mxu0 %vm366_vm2, %v859_v26 }
 0x399   : > { %1356 = vmatprep.mubr.msk.f32.mxu0 %vm1657_vm0, %v1656_v0  ;;  %1349 = vmatpush3.msra.mxu0 %v1043_v4 }
 0x39a   : > { %1350 = vmatprep.subr.mxu0 %v1656_v0 }
 0x39b   : > { %1351 = vmatpush3.msra.mxu0 %v1042_v5 }
 0x39c   : > { %1352 = vmatprep.subr.mxu0 %v1656_v0 }
 0x39d   : > { %v1457_v27 = vpop.eup %1456  ;;  %1353 = vmatpush3.msra.mxu0 %v1041_v6 }
 0x39e   : > { %v451_v28 = vmul.f32 %v1457_v27, %v1455_v21  ;;  %1354 = vmatprep.subr.mxu0 %v1656_v0 }
 0x39f   : > { %1355 = vmatpush3.msra.mxu0 %v1040_v7 }
 0x3a0   : > { %1316 = vmatmul.mubr.msk.f32.vlgmr.msra.gmra.mxu1 %vm366_vm2, %v451_v28 }
 0x3a1   : > { %1319 = vmatpush3.xpose.msk.msra.mxu1 %vm366_vm2, %v531_v12  ;;  %1320 = vmatprep.mubr.msk.f32.mxu1 %vm1657_vm0, %v1656_v0 }
 0x3a2   : > { %1323 = vmatprep.subr.mxu1 %v1656_v0 }
 0x3a4   : > { %1321 = vmatmul.mubr.msk.f32.vlgmr.msra.gmra.mxu1 %vm366_vm2, %v529_v13 }
 0x3a5   : > { %1325 = vmatprep.mubr.msk.f32.mxu1 %vm1657_vm0, %v1656_v0 }
 0x454   : > { %v767_v29 = vpop.f32.mrf.mxu0 }
 0x455   : > { %v771_v30 = vsel %vm366_vm2, %v767_v29, -inf }
 0x456   : > { %772 = vmax.xlane.f32.xlu0 %v771_v30  ;;  %v1332_v31 = vpop.f32.mrf.mxu0 }
 0x458   : > { %v932_v32 = vpop.f32.mrf.mxu0 }
 0x459   : > { %v936_v39 = vsel %vm366_vm2, %v932_v32, -inf }
 0x45a   : > { %v1342_v33 = vpop.f32.mrf.mxu0 }
 0x460   : > { %v1898_v34 = vpop.f32.mrf.mxu1 }
 0x462   : > { %v1317_v35 = vpop.f32.mrf.mxu1 }
 0x464   : > { %v602_v36 = vpop.f32.mrf.mxu1 }
 0x465   : > { %v606_v37 = vsel %vm366_vm2, %v602_v36, -inf }
 0x466   : > { %607 = vmax.xlane.f32.xlu1 %v606_v37  ;;  %v1322_v38 = vpop.f32.mrf.mxu1 }
 0x46a   : > { %937 = vmax.xlane.f32.xlu1 %v936_v39 }
 0x4df   : > { %v773_v40 = vpop.xlane.xlu0 %772 }
 0x4e0   : > { %v774_v41 = vsub.f32 %v767_v29, %v773_v40 }
 0x4e2   : > { %v775_v42 = vmul.f32 1.442695, %v774_v41 }
 0x4e4   : > { %1458 = vpow2.f32 %v775_v42 }
 0x4ef   : > { %v608_v43 = vpop.xlane.xlu1 %607 }
 0x4f0   : > { %v609_v51 = vsub.f32 %v602_v36, %v608_v43 }
 0x4f1   : > { %v1459_v44 = vpop.eup %1458 }
 0x4f2   : > { %v777_v45 = vsel %vm366_vm2, %v1459_v44, 0.0  ;;  %v610_v52 = vmul.f32 1.442695, %v609_v51 }
 0x4f3   : > { %778 = vadd.xlane.f32.xlu1 %v777_v45  ;;  %v938_v46 = vpop.xlane.xlu1 %937 }
 0x4f4   : > { %v939_v47 = vsub.f32 %v932_v32, %v938_v46 }
 0x4f6   : > { %v940_v48 = vmul.f32 1.442695, %v939_v47 }
 0x4f8   : > { %1460 = vpow2.f32 %v940_v48 }
 0x4f9   : > { %1462 = vpow2.f32 %v610_v52 }
 0x504   : > { %617 = vrot.lane.b32.xlu1 %v1860_v8, %s1666_s10  ;;  %s1126_s10 = scalar_lea.sflag [#allocation4], %s1829_s23 }
 0x505   : > { %v1461_v49 = vpop.eup %1460 }
 0x506   : > { %v942_v50 = vsel %vm366_vm2, %v1461_v49, 0.0  ;;  %v1463_v53 = vpop.eup %1462 }
 0x507   : > { %943 = vadd.xlane.f32.xlu0 %v942_v50  ;;  %v612_v54 = vsel %vm366_vm2, %v1463_v53, 0.0 }
 0x51d   : > { %782 = vrot.lane.b32.xlu0 %v1860_v8, %s1667_s9  ;;  %s1576_s9 = scalar_lea.vmem %s1140_s16, 128 }
 0x51e   : > { %p1577_p4 = scmp.ne.s32.totalorder %s1140_s16, %s1576_s9 }
 0x520   : > { %p1578_p12 = pnand %p1577_p4, %p1993_p6 }
 0x522   : > { %p1579_p0 = pneg %p1578_p12 }
 0x528   : > { %613 = vadd.xlane.f32.xlu1 %v612_v54 }
 0x539   : > { %947 = vrot.lane.b32.xlu1 %v1860_v8, %s1668_s11  ;;  %s1582_s11 = scalar_lea.vmem %s1581_s27, 256 }
 0x53a   : > { %p1584_p3 = scmp.lt.s32.totalorder %s1582_s11, %s1576_s9 }
 0x53c   : > { %p1585_p7 = por %p1584_p3, %p1583_p5 }
 0x53e   : > { %p1586_p9 = pnand %p1585_p7, %p1579_p0 }
 0x57c   : > { %v779_v55 = vpop.xlane.xlu1 %778 }
 0x580   : > { %v618_v56 = vpop.permute.xlu1 %617 }
 0x581   : > { %1324 = vmatpush3.msra.mxu1 %v618_v56 }
 0x582   : > { %1333 = vmatprep.subr.mxu1 %v1656_v0 }
 0x590   : > { %v944_v58 = vpop.xlane.xlu0 %943 }
 0x594   : > { %v783_v62 = vpop.permute.xlu0 %782 }
 0x5b1   : > { %v614_v57 = vpop.xlane.xlu1 %613 }
 0x5b2   : > { %1464 = vrcp.f32 %v614_v57 }
 0x5b3   : > { %1466 = vrcp.f32 %v779_v55 }
 0x5b4   : > { %1468 = vrcp.f32 %v944_v58 }
 0x5b5   : > { %v948_v2 = vpop.permute.xlu1 %947 }
 0x5bf   : > { %v1465_v59 = vpop.eup %1464 }
 0x5c0   : > { %v616_v60 = vmul.f32 %v1465_v59, %v1463_v53  ;;  %v1467_v61 = vpop.eup %1466 }
 0x5c1   : > { %v781_v63 = vmul.f32 %v1467_v61, %v1459_v44  ;;  %v1469_v1 = vpop.eup %1468 }
 0x5c2   : > { %1326 = vmatmul.mubr.msk.f32.vlgmr.msra.gmra.mxu1 %vm366_vm2, %v616_v60  ;;  %v946_v3 = vmul.f32 %v1469_v1, %v1461_v49 }
 0x5c3   : > { %1334 = vmatpush3.msra.mxu1 %v783_v62  ;;  %1335 = vmatprep.mubr.msk.f32.mxu1 %vm1657_vm0, %v1656_v0 }
 0x5c4   : > { %1343 = vmatprep.subr.mxu1 %v1656_v0 }
 0x5c6   : > { %1336 = vmatmul.mubr.msk.f32.vlgmr.msra.gmra.mxu1 %vm366_vm2, %v781_v63 }
 0x5c7   : > { %1344 = vmatpush3.msra.mxu1 %v948_v2  ;;  %1345 = vmatprep.mubr.msk.f32.mxu1 %vm1657_vm0, %v1656_v0 }
 0x5ca   : > { %1346 = vmatmul.mubr.msk.f32.vlgmr.msra.gmra.mxu1 %vm366_vm2, %v946_v3 }
 0x682   : > { %v689_v8 = vpop.f32.mrf.mxu1 }
 0x683   : > { %1024 = vrot.lane.b32.xlu1 %v689_v8, %s1669_s14 }
 0x684   : > { %v1327_v9 = vpop.f32.mrf.mxu1 }
 0x686   : > { %v854_v10 = vpop.f32.mrf.mxu1 }
 0x687   : > { %1028 = vrot.lane.b32.xlu0 %v854_v10, %s1670_s30 }
 0x688   : > { %v1337_v11 = vpop.f32.mrf.mxu1 }
 0x68a   : > { %v1019_v12 = vpop.f32.mrf.mxu1 }
 0x68b   : > { %1032 = vrot.lane.b32.xlu1 %v1019_v12, %s1671_s29 }
 0x68c   : > { %v1347_v13 = vpop.f32.mrf.mxu1 }
 0x6f5   : > { %v1025_v14 = vpop.permute.xlu1 %1024 }
 0x6f6   : > { %v1035_v0 = vsel %vm366_vm2, %v1898_v34, %v1025_v14 }
 0x6f9   : > { %v1029_v15 = vpop.permute.xlu0 %1028 }
 0x6fa   : > { %v1037_v16 = vsel %vm1036_vm3, %v1035_v0, %v1029_v15 }
 0x6fd   : > { %v1033_v17 = vpop.permute.xlu1 %1032 }
 0x6fe   : > { %v1039_v18 = vsel %vm1038_vm4, %v1037_v16, %v1033_v17 }
 0x6ff   : > { %1357 = vmatmul.mubr.msk.f32.vlgmr.msra.gmra.mxu0 %vm287_vm1, %v1039_v18 }
 0x7bf   : > { %v1120_v20 = vpop.f32.mrf.mxu0 }
 0x7c0   : > { %v1121_v21 = vadd.f32 %v1265_v19, %v1120_v20 }
 0x7c1   : > { %v1358_v22 = vpop.f32.mrf.mxu0 }
 0x7c2   : > { %1124 = vst.msk [vmem:[%s281_s15] sm:$0xff] %vm287_vm1, %v1121_v21 }
 0x7c3   : > { %1589 = shalt.err (!%p1586_p9)
}
 0x7c4   : > { %s1590_s14 = scalar_lea.hbm %s1932_s8, 128  ;;  %s1594_s29 = scalar_lea.hbm %s1975_s5, 256 }
 0x7c5   : > { %p1591_p13 = scmp.ne.s32.totalorder %s1932_s8, %s1590_s14  ;;  %p1595_p11 = scmp.lt.s32.totalorder %s1932_s8, %s1975_s5 }
 0x7c6   : > { %p1596_p1 = scmp.lt.s32.totalorder %s1594_s29, %s1590_s14 }
 0x7c7   : > { %p1592_p10 = pnand %p1591_p13, %p1993_p6 }
 0x7c8   : > { %p1597_p2 = por %p1596_p1, %p1595_p11 }
 0x7c9   : > { %p1593_p8 = pneg %p1592_p10 }
 0x7cb   : > { %p1598_p4 = pnand %p1597_p2, %p1593_p8 }
 0x7cd   : > { %1601 = shalt.err (!%p1598_p4)
}
 0x7ce   : > { %1373 = dma.vmem_to_hbm [thread:$0]  (%p1993_p6), %s1140_s16, 128, %s1932_s8, %s1126_s10  }
 0x7cf PF: > { %s1151_s13 = sand.u32 1, %s1636_s18   ;;  %p1994_p12 = scmp.ne.s32.totalorder %s1981_s25, 0 }
 0x7d0   : > { %p1995_p0 = scmp.ge.s32.totalorder %s1648_s21, 2  ;;  %s1152_s15 = scalar_lea.sflag [#allocation4], %s1151_s13 }
 0x7d2   : > { %p1390_p5 = pnand %p1995_p0, %p1994_p12 }
 0x7d4   : > { %p1391_p3 = pneg %p1390_p5 }
 0x7d6   : > { %1631 = dma.done.wait (%p1391_p3), %s1152_s15, 128  }
 0x7d7   : > { %1633 = vsyncadd (%p1391_p3), %s1152_s15, 4294967168  ;;  %p20_p7 = scmp.ge.s32.totalorder %s1783_s28, 4   ;;  %s1996_s18 = smov %s1640_s19 }
 0x7d8   : > { %s1997_s19 = smov %s1644_s20  ;;  %s1998_s20 = smov %s1793_s6 }
 0x7d9   : > { %s1999_s21 = smov %s1783_s28  ;;  %22 = sbr.rel (!%p20_p7) target bundleno = 7 (0x7), region = 97 }
 0x7de   :  { %1157 = vsyncpa [#allocation3], 1 }
 0x7df   :  { %1159 = vsyncpa [#allocation3 + $0x1], 1 }
 0x7e0   :  { %1160 = vsyncpa [#allocation6], 1 }
 0x7e1   :  { %1161 = vsyncpa [#allocation9], 1 }
 0x7e2   :  { %1162 = vsyncpa [#allocation4], 1 }
 0x7e3   :  { %1164 = vsyncpa [#allocation4 + $0x1], 1 }

</bundles_post_ra>
